<compile_context>
chip_gen: v6e
topology: v6e:2x2x1
jax: 0.10.0
libtpu: 0.0.40
codegen_flags: <defaults>
</compile_context>

<pallas_src>
import functools

import jax
import jax.numpy as jnp
import numpy as np
from jax.experimental import pallas as pl
from jax.experimental.pallas import tpu as pltpu


def _round_up(x, m):
    return ((x + m - 1) // m) * m


def _hidden_tanh_bf16_default():
    """Use bf16 tanh for hidden layers only where the EUP/VPU have bf16 paths
    (v6e / v7x).  v5e and older keep the f32 tanh path."""
    try:
        kind = jax.devices()[0].device_kind.lower()
    except Exception:
        return False
    return any(tag in kind for tag in ("v6", "v7", "7x"))


# -----------------------------------------------------------------------------
# Pallas kernel: one grid step == one HW lane tile, ALL classes fused.
# -----------------------------------------------------------------------------
def cssr_kernel(x_ref, *refs, batch, reduction, clip_len, hidden_tanh_bf16):
    """x_ref : (B, C, T) bf16 input tile (T = HW lane tile, multiple of 128).
    refs[:-2] : fused per-layer weights, 2-D bf16, VMEM-resident:
                  layer 0  : (num_class*out0, C)               (class-stacked)
                  layer l>0: (num_class*out_l, num_class*in_l) (block-diagonal)
    refs[-2]  : sel, (num_class, num_class*latent) f32 0/1 selector.
    refs[-1]  : out_ref, (B*num_class, T) f32 error tile (row = b*num_class+k).
    """
    *w_refs, sel_ref, out_ref = refs
    n_layers = len(w_refs)

    # Encoder + latent conv.  Classes are fused into the matmul M/K dims, so
    # there is exactly one MXU pass per layer per batch element.
    # TODO(synk): for large batch, stage the latent acts in a VMEM scratch and
    # run a lax.fori_loop over b to bound vreg live ranges.
    acts = [x_ref[b] for b in range(batch)]             # each (C, T) bf16
    for li, w_ref in enumerate(w_refs):
        w = w_ref[...]                                   # (M_l, K_l) bf16
        last = li == n_layers - 1
        nxt = []
        for a in acts:
            pre = jnp.dot(w, a, preferred_element_type=jnp.float32)
            if last:
                nxt.append(jnp.tanh(pre))                # latent tanh stays f32
            elif hidden_tanh_bf16:
                nxt.append(jnp.tanh(pre.astype(jnp.bfloat16)))   # bf16 EUP (v6e/v7x)
            else:
                nxt.append(jnp.tanh(pre).astype(jnp.bfloat16))   # f32 EUP (v5e)
        acts = nxt

    # acts[b]: (num_class*latent, T) f32 latent.  Batch mean is plain VPU adds
    # over the per-batch arrays (batch sits on the major axis, so the mean
    # never crosses lane tiles and the grid can tile HW freely).
    z_sum = acts[0]
    for a in acts[1:]:
        z_sum = z_sum + a
    z_mean = z_sum * (1.0 / batch)

    # Per-class sum over latent channels of (z_mean - lt_b)^2 via a tiny 0/1
    # selector matmul (MXU idle here; avoids a sublane-splitting reshape).
    sel = sel_ref[...]                                   # (NC, NC*latent) f32
    rows = []
    for a in acts:
        d = z_mean - a
        rows.append(jnp.dot(sel, d * d, preferred_element_type=jnp.float32))  # (NC, T)

    # Single full-block, lane-dense store (no per-batch masked sublane stores).
    err = jnp.concatenate(rows, axis=0) * reduction      # (B*NC, T)
    out_ref[...] = jnp.clip(err, -clip_len, clip_len)


# -----------------------------------------------------------------------------
# Wrapper
# -----------------------------------------------------------------------------
def cssr_forward(x_nchw, class_weights_oi, *, reduction, clip_len=100.0,
                 lane_tile=512, hidden_tanh_bf16=None):
    """x_nchw: [B, C, H, W] float32.
    class_weights_oi: list over layers; layer l stacked over classes with shape
                      [num_class, out_ch_l, in_ch_l] (PyTorch Conv2d 1x1 layout,
                      kernel dims squeezed).  Last entry is the latent conv.
    Returns logits [B, num_class, H, W] float32."""
    if not class_weights_oi:
        raise ValueError("class_weights_oi must contain at least the latent conv "
                         "(CSSRClassifier with ae_latent > 0).")
    B, C, H, W = x_nchw.shape
    HW = H * W
    NC = int(class_weights_oi[0].shape[0])
    latent = int(class_weights_oi[-1].shape[1])
    if hidden_tanh_bf16 is None:
        hidden_tanh_bf16 = _hidden_tanh_bf16_default()

    # HW is padded to a lane-tile multiple (128-aligned) so any H, W works.
    # Padded pixels are zero; bias-free conv + tanh keeps them zero, and they
    # are cropped after the call.
    lane_tile = _round_up(int(lane_tile), 128)
    T = min(lane_tile, _round_up(HW, 128))
    HW_pad = _round_up(HW, T)
    n_tiles = HW_pad // T

    x3 = x_nchw.reshape(B, C, HW)
    if HW_pad != HW:
        x3 = jnp.pad(x3, ((0, 0), (0, 0), (0, HW_pad - HW)))
    x3 = x3.astype(jnp.bfloat16)

    # Fuse classes into each layer's weight:
    #   layer 0 : class-stacked (NC*out0, C)      (input shared by all classes)
    #   layer l : block-diagonal (NC*out_l, NC*in_l)
    # TODO(synk): for very large num_class the block-diagonal fusion wastes MXU
    # work on zero blocks; block G classes per grid step instead.
    eye = jnp.eye(NC, dtype=jnp.float32)
    fused = []
    for li, w in enumerate(class_weights_oi):            # w: (NC, out, in) f32
        nc, o, i = w.shape
        if li == 0:
            wf = w.reshape(nc * o, i)
        else:
            wf = jnp.einsum("kab,kc->kacb", w, eye).reshape(nc * o, nc * i)
        fused.append(wf.astype(jnp.bfloat16))

    # 0/1 selector summing each class's latent channels in the epilogue.
    sel = jnp.repeat(eye, latent, axis=1)                 # (NC, NC*latent) f32

    # x / out are pipelined over the HW-tile grid; weights + sel use constant
    # index_maps (one DMA, VMEM-resident across all tiles).
    in_specs = [pl.BlockSpec((B, C, T), lambda j: (0, 0, j))]
    for wf in fused:
        in_specs.append(pl.BlockSpec(wf.shape, lambda j: (0, 0)))
    in_specs.append(pl.BlockSpec(sel.shape, lambda j: (0, 0)))
    out_spec = pl.BlockSpec((B * NC, T), lambda j: (0, j))

    # Advisory cost estimate for XLA's scheduler.
    total_n = B * HW_pad
    flops = 2 * NC * (NC * latent) * total_n              # selector matmul
    transcendentals = 0
    w_bytes = int(sel.size) * 4
    for wf in fused:
        m, k = wf.shape
        flops += 2 * m * k * total_n
        transcendentals += m * total_n
        w_bytes += int(wf.size) * 2
    cost = pl.CostEstimate(
        flops=int(flops), transcendentals=int(transcendentals),
        bytes_accessed=int(x3.size) * 2 + w_bytes + B * NC * HW_pad * 4)

    kernel = functools.partial(
        cssr_kernel, batch=B, reduction=float(reduction),
        clip_len=float(clip_len), hidden_tanh_bf16=bool(hidden_tanh_bf16))

    out = pl.pallas_call(
        kernel,
        out_shape=jax.ShapeDtypeStruct((B * NC, HW_pad), jnp.float32),
        grid=(n_tiles,),
        in_specs=in_specs,
        out_specs=out_spec,
        compiler_params=pltpu.CompilerParams(
            dimension_semantics=("parallel",),             # tiles independent (v7x megacore)
            vmem_limit_bytes=32 * 1024 * 1024),            # explicit (v5e scoped default is 16 MiB)
        cost_estimate=cost,
    )(x3, *fused, sel)

    # (B*NC, HW_pad) rows are ordered (batch-major, class-minor) -> the reshape
    # to [B, num_class, H, W] is free; only the pad crop is a cheap slice.
    return out.reshape(B, NC, HW_pad)[:, :, :HW].reshape(B, NC, H, W)


# -----------------------------------------------------------------------------
# Pure-JAX reference (mirrors the PyTorch forward; bias-free 1x1 convs)
# -----------------------------------------------------------------------------
def cssr_reference(x_nchw, class_weights_oi, *, reduction, clip_len=100.0):
    """class_weights_oi: list of [num_class, out_ch, in_ch] f32."""
    num_class = class_weights_oi[0].shape[0]
    cls_ers = []
    for k in range(num_class):
        cur = x_nchw
        for w in class_weights_oi:
            cur = jnp.tanh(jnp.einsum("oc,bchw->bohw", w[k], cur))
        lt = cur  # [B, latent, H, W]
        z_mean = jnp.mean(lt, axis=0, keepdims=True)
        err = jnp.sum((z_mean - lt) ** 2, axis=1, keepdims=True) * reduction
        err = jnp.clip(err, -clip_len, clip_len)
        cls_ers.append(err)
    return jnp.concatenate(cls_ers, axis=1)


def _bf16_representable(a):
    """Round to the bf16 grid (and back to f32) so the kernel's bf16 operand
    cast is lossless and the f32 reference comparison stays tight."""
    return a.astype(jnp.bfloat16).astype(jnp.float32)


# -----------------------------------------------------------------------------
# Main
# -----------------------------------------------------------------------------
if __name__ == "__main__":
    # Config mirroring CSSRClassifier.__init__
    config = {
        "ae_hidden": [8],       # hidden_layers
        "ae_latent": 4,         # latent_chan
        "error_measure": "L2",
        "model": "pcssr",       # -> reduction = -1 * gamma
        "gamma": 1.0,
    }
    inchannels = 4
    num_class = 3
    B, H, W = 2, 16, 16
    reduction = (-1.0 if config["model"] == "pcssr" else 1.0) * config["gamma"]
    clip_len = 100.0

    key = jax.random.PRNGKey(0)
    key, xk = jax.random.split(key)
    x = jax.random.normal(xk, (B, inchannels, H, W), dtype=jnp.float32)
    x = _bf16_representable(x)

    # Per-class 1x1 conv weights (encoder hidden layers + latent conv),
    # PyTorch layout [out, in] (1x1 kernel squeezed), stacked over classes.
    layer_dims = []
    cin = inchannels
    for h in config["ae_hidden"]:
        layer_dims.append((cin, h))
        cin = h
    layer_dims.append((cin, config["ae_latent"]))  # latent conv

    class_weights_oi = []  # list of [num_class, out, in] f32 (bf16-representable)
    for (ci, co) in layer_dims:
        key, wk = jax.random.split(key)
        bound = 1.0 / np.sqrt(ci)
        w = jax.random.uniform(
            wk, (num_class, co, ci), dtype=jnp.float32, minval=-bound, maxval=bound
        )
        class_weights_oi.append(_bf16_representable(w))

    use_bf16_tanh = _hidden_tanh_bf16_default()
    logits = cssr_forward(
        x, class_weights_oi, reduction=reduction, clip_len=clip_len,
        hidden_tanh_bf16=use_bf16_tanh)
    logits = jax.block_until_ready(logits)

    ref = cssr_reference(x, class_weights_oi, reduction=reduction, clip_len=clip_len)
    ref = jax.block_until_ready(ref)

    assert logits.shape == (B, num_class, H, W), logits.shape
    # Divergence vs. the f32 reference: bf16 rounding of the inter-layer
    # activation (inputs/weights are bf16-exact); the bf16-tanh hidden path on
    # v6e/v7x adds at most ~1e-2 more, hence the slightly wider tolerance there.
    tol = 3e-2 if use_bf16_tanh else 2e-2
    np.testing.assert_allclose(
        np.asarray(logits), np.asarray(ref), rtol=tol, atol=tol
    )

    print("KERNEL_OK")
</pallas_src>

<mosaic_0001>
module attributes {stable_mosaic.version = 11 : i64} {
  func.func @cssr_kernel(%arg0: i32, %arg1: memref<2x4x256xbf16, #tpu.memory_space<vmem>>, %arg2: memref<24x4xbf16, #tpu.memory_space<vmem>>, %arg3: memref<12x24xbf16, #tpu.memory_space<vmem>>, %arg4: memref<3x12xf32, #tpu.memory_space<vmem>>, %arg5: memref<6x256xf32, #tpu.memory_space<vmem>>) attributes {dimension_semantics = [#tpu.dimension_semantics<parallel>], iteration_bounds = array<i64: 1>, scalar_prefetch = 0 : i64, scratch_operands = 0 : i64, tpu.core_type = #tpu.core_type<tc>, window_params = [{transform_indices = @transform_0, window_bounds = array<i64: 2, 4, 256>}, {pipeline_mode = #tpu.pipeline_mode<synchronous>, transform_indices = @transform_1, window_bounds = array<i64: 24, 4>}, {pipeline_mode = #tpu.pipeline_mode<synchronous>, transform_indices = @transform_2, window_bounds = array<i64: 12, 24>}, {pipeline_mode = #tpu.pipeline_mode<synchronous>, transform_indices = @transform_3, window_bounds = array<i64: 3, 12>}, {transform_indices = @transform_4, window_bounds = array<i64: 6, 256>}]} {
    %c0 = arith.constant 0 : index
    %c0_0 = arith.constant 0 : index
    %c0_1 = arith.constant 0 : index
    %0 = vector.load %arg1[%c0, %c0_0, %c0_1] : memref<2x4x256xbf16, #tpu.memory_space<vmem>>, vector<1x4x256xbf16>
    %1 = vector.shape_cast %0 : vector<1x4x256xbf16> to vector<4x256xbf16>
    %c1 = arith.constant 1 : index
    %c0_2 = arith.constant 0 : index
    %c0_3 = arith.constant 0 : index
    %2 = vector.load %arg1[%c1, %c0_2, %c0_3] : memref<2x4x256xbf16, #tpu.memory_space<vmem>>, vector<1x4x256xbf16>
    %3 = vector.shape_cast %2 : vector<1x4x256xbf16> to vector<4x256xbf16>
    %c0_4 = arith.constant 0 : index
    %c0_5 = arith.constant 0 : index
    %4 = vector.load %arg2[%c0_4, %c0_5] : memref<24x4xbf16, #tpu.memory_space<vmem>>, vector<24x4xbf16>
    %cst = arith.constant dense<0.000000e+00> : vector<24x256xf32>
    %5 = tpu.matmul %4, %1, %cst {dimension_numbers = #tpu.dot_dimension_numbers<[1], [0], [0], [1], [0, 0, 1, 1], [], []>} : vector<24x4xbf16>, vector<4x256xbf16>, vector<24x256xf32> -> vector<24x256xf32>
    %6 = math.tanh %5 : vector<24x256xf32>
    %7 = arith.truncf %6 : vector<24x256xf32> to vector<24x256xbf16>
    %cst_6 = arith.constant dense<0.000000e+00> : vector<24x256xf32>
    %8 = tpu.matmul %4, %3, %cst_6 {dimension_numbers = #tpu.dot_dimension_numbers<[1], [0], [0], [1], [0, 0, 1, 1], [], []>} : vector<24x4xbf16>, vector<4x256xbf16>, vector<24x256xf32> -> vector<24x256xf32>
    %9 = math.tanh %8 : vector<24x256xf32>
    %10 = arith.truncf %9 : vector<24x256xf32> to vector<24x256xbf16>
    %c0_7 = arith.constant 0 : index
    %c0_8 = arith.constant 0 : index
    %11 = vector.load %arg3[%c0_7, %c0_8] : memref<12x24xbf16, #tpu.memory_space<vmem>>, vector<12x24xbf16>
    %cst_9 = arith.constant dense<0.000000e+00> : vector<12x256xf32>
    %12 = tpu.matmul %11, %7, %cst_9 {dimension_numbers = #tpu.dot_dimension_numbers<[1], [0], [0], [1], [0, 0, 1, 1], [], []>} : vector<12x24xbf16>, vector<24x256xbf16>, vector<12x256xf32> -> vector<12x256xf32>
    %13 = math.tanh %12 : vector<12x256xf32>
    %cst_10 = arith.constant dense<0.000000e+00> : vector<12x256xf32>
    %14 = tpu.matmul %11, %10, %cst_10 {dimension_numbers = #tpu.dot_dimension_numbers<[1], [0], [0], [1], [0, 0, 1, 1], [], []>} : vector<12x24xbf16>, vector<24x256xbf16>, vector<12x256xf32> -> vector<12x256xf32>
    %15 = math.tanh %14 : vector<12x256xf32>
    %16 = arith.addf %13, %15 : vector<12x256xf32>
    %cst_11 = arith.constant 5.000000e-01 : f32
    %17 = vector.broadcast %cst_11 : f32 to vector<12x256xf32>
    %18 = arith.mulf %16, %17 : vector<12x256xf32>
    %c0_12 = arith.constant 0 : index
    %c0_13 = arith.constant 0 : index
    %19 = vector.load %arg4[%c0_12, %c0_13] : memref<3x12xf32, #tpu.memory_space<vmem>>, vector<3x12xf32>
    %20 = arith.subf %18, %13 : vector<12x256xf32>
    %21 = arith.mulf %20, %20 : vector<12x256xf32>
    %cst_14 = arith.constant dense<0.000000e+00> : vector<3x256xf32>
    %22 = tpu.matmul %19, %21, %cst_14 {dimension_numbers = #tpu.dot_dimension_numbers<[1], [0], [0], [1], [0, 0, 1, 1], [], []>} : vector<3x12xf32>, vector<12x256xf32>, vector<3x256xf32> -> vector<3x256xf32>
    %23 = arith.subf %18, %15 : vector<12x256xf32>
    %24 = arith.mulf %23, %23 : vector<12x256xf32>
    %cst_15 = arith.constant dense<0.000000e+00> : vector<3x256xf32>
    %25 = tpu.matmul %19, %24, %cst_15 {dimension_numbers = #tpu.dot_dimension_numbers<[1], [0], [0], [1], [0, 0, 1, 1], [], []>} : vector<3x12xf32>, vector<12x256xf32>, vector<3x256xf32> -> vector<3x256xf32>
    %26 = tpu.concatenate %22, %25 in 0 : vector<3x256xf32>, vector<3x256xf32> -> vector<6x256xf32>
    %cst_16 = arith.constant -1.000000e+00 : f32
    %27 = vector.broadcast %cst_16 : f32 to vector<6x256xf32>
    %28 = arith.mulf %26, %27 : vector<6x256xf32>
    %cst_17 = arith.constant -1.000000e+02 : f32
    %cst_18 = arith.constant 1.000000e+02 : f32
    %29 = vector.broadcast %cst_17 : f32 to vector<6x256xf32>
    %30 = arith.maximumf %29, %28 : vector<6x256xf32>
    %31 = vector.broadcast %cst_18 : f32 to vector<6x256xf32>
    %32 = arith.minimumf %31, %30 : vector<6x256xf32>
    %c0_19 = arith.constant 0 : index
    %c0_20 = arith.constant 0 : index
    %33 = vector.load %arg5[%c0_19, %c0_20] : memref<6x256xf32, #tpu.memory_space<vmem>>, vector<6x256xf32>
    tpu.vector_store %arg5[%c0_19, %c0_20], %32 {strides = array<i32>} : memref<6x256xf32, #tpu.memory_space<vmem>>, vector<6x256xf32>,
    return
  }
  func.func @transform_0(%arg0: i32) -> (i32, i32, i32) {
    %c0_i32 = arith.constant 0 : i32
    %c0_i32_0 = arith.constant 0 : i32
    %c0_i32_1 = arith.constant 0 : i32
    return %c0_i32, %c0_i32_0, %arg0 : i32, i32, i32
  }
  func.func @transform_1(%arg0: i32) -> (i32, i32) {
    %c0_i32 = arith.constant 0 : i32
    %c0_i32_0 = arith.constant 0 : i32
    %c0_i32_1 = arith.constant 0 : i32
    return %c0_i32, %c0_i32_0 : i32, i32
  }
  func.func @transform_2(%arg0: i32) -> (i32, i32) {
    %c0_i32 = arith.constant 0 : i32
    %c0_i32_0 = arith.constant 0 : i32
    %c0_i32_1 = arith.constant 0 : i32
    return %c0_i32, %c0_i32_0 : i32, i32
  }
  func.func @transform_3(%arg0: i32) -> (i32, i32) {
    %c0_i32 = arith.constant 0 : i32
    %c0_i32_0 = arith.constant 0 : i32
    %c0_i32_1 = arith.constant 0 : i32
    return %c0_i32, %c0_i32_0 : i32, i32
  }
  func.func @transform_4(%arg0: i32) -> (i32, i32) {
    %c0_i32 = arith.constant 0 : i32
    %c0_i32_0 = arith.constant 0 : i32
    return %c0_i32, %arg0 : i32, i32
  }
}

</mosaic_0001>

<bundles_post_ra>
// kernel: tpu_custom_call.1
= control target key start
LH: loop header
LB: loop body
LE: loop exit
PB: predicated region body
PF: predicated region fallthrough
CT: control target
= control target key end

     0   :  { %9 = vsyncpa [#allocation3], 0  ;;  %s711_s0 = inlined_call_operand.vmem [shape: bf16[2,4,256], index: 0, kind: input, shape index: {}]   ;;  %s712_s1 = inlined_call_operand.vmem [shape: bf16[24,4], index: 1, kind: input, shape index: {}]   ;;  %s713_s2 = inlined_call_operand.vmem [shape: bf16[12,24], index: 2, kind: input, shape index: {}]   ;;  %s714_s3 = inlined_call_operand.hbm [shape: f32[3,12], index: 3, kind: input, shape index: {}]   ;;  %s715_s4 = inlined_call_operand.hbm [shape: f32[6,256], index: 4, kind: output, shape index: {}]  }
   0x1   :  { %10 = vsyncpa [#allocation4], 0  ;;  %s653_s15 = smov [#allocation2]  }
   0x2   :  { %s23_s16 = sshll.u32 %s653_s15, 4  ;;  %s24_s16 = int_to_ptr.vmem [resolvable:$true] %s23_s16 }
   0x3   :  { %s617_s17 = scalar_lea.vmem %s24_s16, 64  ;;  %p622_p1 = scmp.lt.s32.totalorder %s24_s16, %s24_s16 }
   0x4   :  { %p618_p0 = scmp.ne.s32.totalorder %s24_s16, %s617_s17  ;;  %p623_p2 = scmp.lt.s32.totalorder %s617_s17, %s617_s17 }
   0x6   :  { %p624_p3 = por %p623_p2, %p622_p1 }
   0x8   :  { %p625_p4 = pnand %p624_p3, %p618_p0 }
   0xa   :  { %628 = shalt.err (!%p625_p4)
}
   0xb   :  { %26 = dma.hbm_to_vmem [thread:$0]  %s714_s3, 64, %s24_s16, [#allocation3]  }
   0xc   :  { %649 = dma.done.wait [#allocation3], 64  }
   0xd   :  { %650 = vsyncadd [#allocation3], 4294967232  ;;  %v654_v0 = vmov 0   ;;  %vm61_vm0 = vcmask 1041408   ;;  %v566_v7 = vld [vmem:[%s712_s1] sm:$0xff]   ;;  %vm54_vm1 = vcmask 31744  }
   0xe   :  { %100 = vmatprep.mubr.bf16.mxu0 %v654_v0  ;;  %176 = vmatprep.mubr.bf16.mxu1 %v654_v0  ;;  %v541_v1 = vld.sshfl [vmem:[%s711_s0] sm:$0x33 pattern:$0x76325410]  ;;  %v567_v8 = vld [vmem:[%s712_s1 + $0x8] ss:$0 sps:$4 sm:$0xff]  }
   0xf   :  { %v53_v2 = vcombine.high %v541_v1, %v541_v1  ;;  %v545_v3 = vld.sshfl [vmem:[%s711_s0 + $0x4] sm:$0x33 pattern:$0x76325410]  ;;  %v63_v4 = vsel %vm61_vm0, %v541_v1, 0  ;;  %vm216_vm2 = vcmask 1043456  }
  0x10   :  { %v137_v5 = vcombine.high %v545_v3, %v545_v3  ;;  %v139_v6 = vsel %vm61_vm0, %v545_v3, 0  ;;  %v568_v47 = vld [vmem:[%s713_s2] sm:$0x3f]   ;;  %vm212_vm3 = vcmask 195584   ;;  %v655_v48 = vmov 0.0   ;;  %s656_s2 = smov [#allocation5]  }
  0x11   :  { %542 = vmatprep.subr.msk.bf16.mxu0 %vm61_vm0, %v53_v2  ;;  %vm340_vm4 = vcmask 97280   ;;  %vm512_vm5 = vcmask 1042432   ;;  %s529_s27 = sshll.u32 %s656_s2, 4  ;;  %s530_s27 = int_to_ptr.vmem [resolvable:$true] %s529_s27 }
  0x12   :  { %546 = vmatprep.subr.msk.bf16.mxu1 %vm61_vm0, %v137_v5  ;;  %83 = vmatpush1.bf16.msra.mxu0 %v63_v4  ;;  %s629_s28 = scalar_lea.vmem %s530_s27, 256  ;;  %p634_p6 = scmp.lt.s32.totalorder %s530_s27, %s530_s27 }
  0x13   :  { %159 = vmatpush1.bf16.msra.mxu1 %v139_v6  ;;  %p630_p5 = scmp.ne.s32.totalorder %s530_s27, %s629_s28  ;;  %p635_p7 = scmp.lt.s32.totalorder %s629_s28, %s629_s28 }
  0x15   :  { %543 = vmatmul.mubr.msk.bf16.vlgmr.msra.gmra.mxu0 %vm54_vm1, %v566_v7  ;;  %p636_p8 = por %p635_p7, %p634_p6 }
  0x16   :  { %547 = vmatmul.mubr.msk.bf16.vlgmr.msra.gmra.mxu1 %vm54_vm1, %v566_v7  ;;  %110 = vmatprep.mubr.bf16.mxu0 %v654_v0 }
  0x17   :  { %186 = vmatprep.mubr.bf16.mxu1 %v654_v0  ;;  %p637_p9 = pnand %p636_p8, %p630_p5 }
  0x1d   :  { %544 = vmatmul.mubr.msk.bf16.gmra.mxu0 %vm54_vm1, %v567_v8 }
  0x1e   :  { %548 = vmatmul.mubr.msk.bf16.gmra.mxu1 %vm54_vm1, %v567_v8  ;;  %255 = vmatprep.mubr.bf16.mxu0 %v654_v0 }
  0x1f   :  { %308 = vmatprep.mubr.bf16.mxu1 %v654_v0 }
  0xd5   :  { %v102_v9 = vpop.f32.mrf.mxu0 }
  0xd6   :  { %v178_v10 = vpop.f32.mrf.mxu1 }
  0xd7   :  { %v104_v11 = vpop.f32.mrf.mxu0 }
  0xd8   :  { %v180_v12 = vpop.f32.mrf.mxu1  ;;  %569 = vtanh.f32 %v104_v11 }
  0xd9   :  { %v106_v13 = vpop.f32.mrf.mxu0 }
  0xda   :  { %v182_v14 = vpop.f32.mrf.mxu1 }
  0xdb   :  { %v108_v15 = vpop.f32.mrf.mxu0 }
  0xdc   :  { %571 = vtanh.f32 %v108_v15  ;;  %v184_v16 = vpop.f32.mrf.mxu1 }
  0xdd   :  { %573 = vtanh.f32 %v184_v16  ;;  %v112_v17 = vpop.f32.mrf.mxu0 }
  0xde   :  { %575 = vtanh.f32 %v112_v17  ;;  %v188_v18 = vpop.f32.mrf.mxu1 }
  0xdf   :  { %577 = vtanh.f32 %v188_v18  ;;  %v114_v19 = vpop.f32.mrf.mxu0 }
  0xe0   :  { %579 = vtanh.f32 %v114_v19  ;;  %v190_v20 = vpop.f32.mrf.mxu1 }
  0xe1   :  { %581 = vtanh.f32 %v190_v20  ;;  %v116_v21 = vpop.f32.mrf.mxu0 }
  0xe2   :  { %583 = vtanh.f32 %v180_v12  ;;  %v192_v22 = vpop.f32.mrf.mxu1 }
  0xe3   :  { %585 = vtanh.f32 %v106_v13  ;;  %v117_v23 = vpop.f32.mrf.mxu0 }
  0xe4   :  { %587 = vtanh.f32 %v182_v14  ;;  %v193_v24 = vpop.f32.mrf.mxu1 }
  0xe5   :  { %589 = vtanh.f32 %v102_v9  ;;  %v570_v25 = vpop.eup %569 }
  0xe6   :  { %591 = vtanh.f32 %v178_v10 }
  0xe9   :  { %v572_v26 = vpop.eup %571 }
  0xea   :  { %v574_v27 = vpop.eup %573  ;;  %v126_v39 = vpack.c.bf16 %v572_v26, %v570_v25  ;;  %v331_v25 = vld [vmem:[#allocation2] sm:$0x7] }
  0xeb   :  { %v576_v28 = vpop.eup %575 }
  0xec   :  { %v578_v29 = vpop.eup %577  ;;  %v127_v30 = vpack.c.bf16 %v576_v28, %v576_v28 }
  0xed   :  { %v580_v31 = vpop.eup %579  ;;  %v203_v32 = vpack.c.bf16 %v578_v29, %v578_v29 }
  0xee   :  { %v582_v33 = vpop.eup %581  ;;  %v128_v34 = vpack.c.bf16 %v580_v31, %v580_v31  ;;  %v218_v38 = vsel %vm216_vm2, %v127_v30, 0 }
  0xef   :  { %v584_v35 = vpop.eup %583  ;;  %v204_v36 = vpack.c.bf16 %v582_v33, %v582_v33  ;;  %v271_v41 = vsel %vm216_vm2, %v203_v32, 0 }
  0xf0   :  { %v586_v37 = vpop.eup %585  ;;  %550 = vmatprep.subr.msk.bf16.mxu0 %vm216_vm2, %v128_v34  ;;  %v202_v42 = vpack.c.bf16 %v574_v27, %v584_v35 }
  0xf1   :  { %v588_v40 = vpop.eup %587  ;;  %552 = vmatprep.subr.msk.bf16.mxu1 %vm216_vm2, %v204_v36  ;;  %236 = vmatpush1.bf16.msra.mxu0 %v218_v38 }
  0xf2   :  { %v590_v43 = vpop.eup %589  ;;  %289 = vmatpush1.bf16.msra.mxu1 %v271_v41  ;;  %237 = vmatprep.subr.bf16.mxu0 %v126_v39 }
  0xf3   :  { %v592_v44 = vpop.eup %591  ;;  %290 = vmatprep.subr.bf16.mxu1 %v202_v42  ;;  %v125_v45 = vpack.c.bf16 %v586_v37, %v590_v43 }
  0xf4   :  { %v201_v46 = vpack.c.bf16 %v588_v40, %v592_v44 }
  0xf5   :  { %238 = vmatpush1.bf16.msra.mxu0 %v125_v45 }
  0xf6   :  { %291 = vmatpush1.bf16.msra.mxu1 %v201_v46 }
  0xf8   :  { %551 = vmatmul.mubr.msk.bf16.vlgmr.msra.gmra.mxu0 %vm212_vm3, %v568_v47 }
  0xf9   :  { %553 = vmatmul.mubr.msk.bf16.vlgmr.msra.gmra.mxu1 %vm212_vm3, %v568_v47  ;;  %414 = vmatprep.mubr.f32.mxu0 %v655_v48 }
  0xfa   :  { %499 = vmatprep.mubr.f32.mxu1 %v655_v48 }
 0x1b8   :  { %v257_v49 = vpop.f32.mrf.mxu0 }
 0x1b9   :  { %593 = vtanh.f32 %v257_v49  ;;  %v310_v50 = vpop.f32.mrf.mxu1 }
 0x1ba   :  { %595 = vtanh.f32 %v310_v50  ;;  %v259_v51 = vpop.f32.mrf.mxu0 }
 0x1bb   :  { %597 = vtanh.f32 %v259_v51  ;;  %v312_v52 = vpop.f32.mrf.mxu1 }
 0x1bc   :  { %599 = vtanh.f32 %v312_v52  ;;  %v261_v53 = vpop.f32.mrf.mxu0 }
 0x1bd   :  { %601 = vtanh.f32 %v261_v53  ;;  %v314_v54 = vpop.f32.mrf.mxu1 }
 0x1be   :  { %603 = vtanh.f32 %v314_v54  ;;  %v263_v55 = vpop.f32.mrf.mxu0 }
 0x1bf   :  { %605 = vtanh.f32 %v263_v55  ;;  %v316_v56 = vpop.f32.mrf.mxu1 }
 0x1c0   :  { %607 = vtanh.f32 %v316_v56 }
 0x1c6   :  { %v594_v57 = vpop.eup %593 }
 0x1c7   :  { %v596_v58 = vpop.eup %595 }
 0x1c8   :  { %v598_v59 = vpop.eup %597  ;;  %v323_v0 = vadd.f32 %v596_v58, %v594_v57 }
 0x1c9   :  { %v600_v60 = vpop.eup %599 }
 0x1ca   :  { %v602_v61 = vpop.eup %601  ;;  %v324_v62 = vadd.f32 %v600_v60, %v598_v59  ;;  %v327_v7 = vmul.f32 0.5, %v323_v0 }
 0x1cb   :  { %v604_v63 = vpop.eup %603 }
 0x1cc   :  { %v606_v1 = vpop.eup %605  ;;  %v325_v2 = vadd.f32 %v604_v63, %v602_v61  ;;  %v328_v6 = vmul.f32 0.5, %v324_v62  ;;  %v332_v15 = vsub.f32 %v327_v7, %v594_v57  ;;  %v421_v16 = vsub.f32 %v327_v7, %v596_v58 }
 0x1cd   :  { %v608_v3 = vpop.eup %607 }
 0x1ce   :  { %v326_v4 = vadd.f32 %v608_v3, %v606_v1  ;;  %v329_v5 = vmul.f32 0.5, %v325_v2  ;;  %v333_v13 = vsub.f32 %v328_v6, %v598_v59  ;;  %v422_v14 = vsub.f32 %v328_v6, %v600_v60 }
 0x1cf   :  { %v336_v23 = vmul.f32 %v332_v15, %v332_v15  ;;  %v425_v24 = vmul.f32 %v421_v16, %v421_v16 }
 0x1d0   :  { %v330_v8 = vmul.f32 0.5, %v326_v4  ;;  %v334_v9 = vsub.f32 %v329_v5, %v602_v61  ;;  %v423_v10 = vsub.f32 %v329_v5, %v604_v63  ;;  %v337_v21 = vmul.f32 %v333_v13, %v333_v13 }
 0x1d1   :  { %v426_v22 = vmul.f32 %v422_v14, %v422_v14 }
 0x1d2   :  { %v335_v11 = vsub.f32 %v330_v8, %v606_v1  ;;  %v424_v12 = vsub.f32 %v330_v8, %v608_v3  ;;  %v338_v19 = vmul.f32 %v334_v9, %v334_v9  ;;  %v427_v20 = vmul.f32 %v423_v10, %v423_v10 }
 0x1d4   :  { %v339_v17 = vmul.f32 %v335_v11, %v335_v11  ;;  %v428_v18 = vmul.f32 %v424_v12, %v424_v12 }
 0x1d6   :  { %554 = vmatprep.subr.msk.mxu0 %vm216_vm2, %v339_v17  ;;  %557 = vmatprep.subr.msk.mxu1 %vm216_vm2, %v428_v18 }
 0x1d7   :  { %555 = vmatpush1.msk.msra.mxu0 %vm216_vm2, %v338_v19  ;;  %558 = vmatpush1.msk.msra.mxu1 %vm216_vm2, %v427_v20 }
 0x1d8   :  { %380 = vmatprep.subr.mxu0 %v337_v21  ;;  %465 = vmatprep.subr.mxu1 %v426_v22 }
 0x1d9   :  { %381 = vmatpush1.msra.mxu0 %v336_v23  ;;  %466 = vmatpush1.msra.mxu1 %v425_v24 }
 0x1da   :  { %559 = vmatmul.mubr.msk.f32.vlgmr.msra.gmra.mxu1 %vm340_vm4, %v331_v25  ;;  %556 = vmatmul.mubr.msk.f32.vlgmr.msra.gmra.mxu0 %vm340_vm4, %v331_v25 }
 0x29a   :  { %v501_v26 = vpop.f32.mrf.mxu1  ;;  %v416_v27 = vpop.f32.mrf.mxu0 }
 0x29b   :  { %v508_v28 = vrot.slane %v501_v26, 5 }
 0x29c   :  { %v503_v29 = vpop.f32.mrf.mxu1  ;;  %v418_v33 = vpop.f32.mrf.mxu0 }
 0x29d   :  { %v513_v30 = vsel %vm512_vm5, %v416_v27, %v508_v28  ;;  %v509_v31 = vrot.slane %v503_v29, 5 }
 0x29e   :  { %v515_v32 = vmul.f32 -1.0, %v513_v30 }
 0x29f   :  { %v514_v34 = vsel %vm512_vm5, %v418_v33, %v509_v31 }
 0x2a0   :  { %v560_v35 = vclamps-f32 %v515_v32, 100.0  ;;  %v516_v36 = vmul.f32 -1.0, %v514_v34 }
 0x2a2   :  { %521 = vst [vmem:[#allocation5] sm:$0x3f] %v560_v35  ;;  %v561_v37 = vclamps-f32 %v516_v36, 100.0 }
 0x2a4   :  { %522 = vst [vmem:[#allocation5 + $0x8] sm:$0x3f] %v561_v37 }
 0x2a5   :  { %640 = shalt.err (!%p637_p9)
}
 0x2a6   :  { %532 = dma.vmem_to_hbm [thread:$0]  %s530_s27, 256, %s715_s4, [#allocation4]  }
 0x2a7   :  { %651 = dma.done.wait [#allocation4], 256  }
 0x2a8   :  { %652 = vsyncadd [#allocation4], 4294967040 }
 0x2a9   :  { %536 = vsyncpa [#allocation3], 1 }
 0x2aa   :  { %537 = vsyncpa [#allocation4], 1 }

</bundles_post_ra>
